<compile_context>
chip_gen: v7x
topology: tpu7x:2x2x1
jax: 0.10.0
libtpu: 0.0.40
codegen_flags: <defaults>
</compile_context>

<pallas_src>
import math
import jax
import jax.numpy as jnp
from jax.experimental import pallas as pl
from jax.experimental.pallas import tpu as pltpu  # noqa: F401  (TPU backend)


# --------------------------------------------------------------------------
# Kernel: pure 2-D matmul / relu pipeline, everything VMEM-resident.
# --------------------------------------------------------------------------
def stgnn_kernel(x_ref, a_ref, w1_ref, b1_ref, th1_ref, th2a_ref, th2b_ref,
                 w2a_ref, w2b_ref, b2_ref, wfc_ref, bfc_ref, out_ref):
    f32 = jnp.float32
    a = a_ref[...]                                           # (R, R) blkdiag adj

    # conv1 (1 x K temporal conv) == banded-weight matmul + bias + relu.
    h0 = jnp.maximum(
        jnp.dot(x_ref[...], w1_ref[...], preferred_element_type=f32)
        + b1_ref[...], 0.0)                                  # (R, T1*S)

    # graph conv 1: block-diag theta1, then block-diag adj mix + relu.
    h1 = jnp.dot(h0, th1_ref[...], preferred_element_type=f32)
    h1g = jnp.maximum(jnp.dot(a, h1, preferred_element_type=f32), 0.0)

    # graph conv 2: concat([h1g, h0]) @ theta2 == split-weight accumulate.
    h2 = (jnp.dot(h1g, th2a_ref[...], preferred_element_type=f32)
          + jnp.dot(h0, th2b_ref[...], preferred_element_type=f32))
    h2g = jnp.maximum(jnp.dot(a, h2, preferred_element_type=f32), 0.0)

    # conv2 on concat([h2g, h0]) == two banded-weight matmuls + bias + relu.
    feats = jnp.maximum(
        jnp.dot(h2g, w2a_ref[...], preferred_element_type=f32)
        + jnp.dot(h0, w2b_ref[...], preferred_element_type=f32)
        + b2_ref[...], 0.0)                                  # (R, T2*OC)

    # final Linear over flattened (time, channel) features.
    out_ref[...] = (jnp.dot(feats, wfc_ref[...], preferred_element_type=f32)
                    + bfc_ref[...])


# --------------------------------------------------------------------------
# Host-side weight repacking (done once): PyTorch layouts -> kernel matrices.
# --------------------------------------------------------------------------
def pack_params(w1_t, b1v, th1, th2, w2_t, b2v, wfc_t, bfcv,
                *, time_steps, temporal_kernel):
    K = temporal_kernel
    T = time_steps
    S, Cin, _, _ = w1_t.shape          # conv1.weight: (S, Cin, 1, K)
    SH = th1.shape[1]
    SO = th2.shape[1]
    OC = w2_t.shape[0]                 # conv2.weight: (OC, SO+S, 1, K)
    P = wfc_t.shape[0]                 # fc.weight:    (P, T2*OC)
    T1 = T - (K - 1)
    T2 = T1 - (K - 1)

    # conv1 as a banded block matrix: (T*Cin, T1*S).
    W1 = jnp.zeros((T * Cin, T1 * S), jnp.float32)
    for t in range(T1):
        for dt in range(K):
            W1 = W1.at[(t + dt) * Cin:(t + dt + 1) * Cin,
                       t * S:(t + 1) * S].set(w1_t[:, :, 0, dt].T)
    b1f = jnp.tile(b1v, T1).reshape(1, T1 * S)

    # theta1 / theta2 as block-diagonal (per-time-step) matrices.
    TH1 = jnp.kron(jnp.eye(T1, dtype=jnp.float32), th1)           # (T1*S,  T1*SH)
    TH2A = jnp.kron(jnp.eye(T1, dtype=jnp.float32), th2[:SH, :])  # (T1*SH, T1*SO)
    TH2B = jnp.kron(jnp.eye(T1, dtype=jnp.float32), th2[SH:, :])  # (T1*S,  T1*SO)

    # conv2 split over its concatenated input channels ([h2g | h0]).
    W2A = jnp.zeros((T1 * SO, T2 * OC), jnp.float32)
    W2B = jnp.zeros((T1 * S, T2 * OC), jnp.float32)
    for t in range(T2):
        for dt in range(K):
            W2A = W2A.at[(t + dt) * SO:(t + dt + 1) * SO,
                         t * OC:(t + 1) * OC].set(w2_t[:, :SO, 0, dt].T)
            W2B = W2B.at[(t + dt) * S:(t + dt + 1) * S,
                         t * OC:(t + 1) * OC].set(w2_t[:, SO:, 0, dt].T)
    b2f = jnp.tile(b2v, T2).reshape(1, T2 * OC)

    WFC = wfc_t.T                                                 # (T2*OC, P)
    bfcf = bfcv.reshape(1, P)
    return (W1, b1f, TH1, TH2A, TH2B, W2A, W2B, b2f, WFC, bfcf)


# --------------------------------------------------------------------------
# Wrapper: flatten batch into rows, block-diagonalize adj, single pallas_call.
# --------------------------------------------------------------------------
def stgnn_forward(x, adj, packed):
    """x: (B, N, T, Cin) f32, adj: (N, N) f32 -> (B, N, P) f32."""
    B, N, T, Cin = x.shape
    P = packed[-1].shape[1]
    R = B * N
    Rp = ((R + 7) // 8) * 8                              # sublane-aligned rows

    xf = x.reshape(R, T * Cin)                           # lane-dense input slab
    a_bd = jnp.kron(jnp.eye(B, dtype=adj.dtype), adj)    # (R, R) blkdiag adj
    if Rp != R:                                          # pad rows (general B*N)
        xf = jnp.pad(xf, ((0, Rp - R), (0, 0)))
        a_bd = jnp.pad(a_bd, ((0, Rp - R), (0, Rp - R)))

    out_flat = pl.pallas_call(
        stgnn_kernel,
        out_shape=jax.ShapeDtypeStruct((Rp, P), jnp.float32),
        # No grid: the whole (tiny) working set maps into VMEM in one
        # invocation -> no per-grid-step pipeline overhead and the constant
        # weights are not double-buffered.
    )(xf, a_bd, *packed)

    return out_flat[:R].reshape(B, N, P)


# --------------------------------------------------------------------------
# Pure-JAX reference mirroring the PyTorch forward (eval, drop=0, no BN).
# --------------------------------------------------------------------------
def ref_forward(x, adj, torch_params, *, temporal_kernel):
    w1_t, b1v, th1, th2, w2_t, b2v, wfc_t, bfcv = torch_params
    K = temporal_kernel
    B, N, T, Cin = x.shape
    T1 = T - (K - 1)
    T2 = T1 - (K - 1)
    hi = jax.lax.Precision.HIGHEST
    x_unf = jnp.stack([x[:, :, dt:dt + T1, :] for dt in range(K)], axis=3)
    h0 = jax.nn.relu(
        jnp.einsum('bntki,oik->bnto', x_unf, w1_t[:, :, 0, :], precision=hi)
        + b1v)
    h1 = jnp.einsum('bnts,sh->bnth', h0, th1, precision=hi)
    h1g = jax.nn.relu(jnp.einsum('ij,bjth->bith', adj, h1, precision=hi))
    h1c = jnp.concatenate([h1g, h0], axis=-1)
    h2 = jnp.einsum('bntc,co->bnto', h1c, th2, precision=hi)
    h2g = jax.nn.relu(jnp.einsum('ij,bjto->bito', adj, h2, precision=hi))
    h2c = jnp.concatenate([h2g, h0], axis=-1)
    h2_unf = jnp.stack([h2c[:, :, dt:dt + T2, :] for dt in range(K)], axis=3)
    hc2 = jax.nn.relu(
        jnp.einsum('bntkc,ock->bnto', h2_unf, w2_t[:, :, 0, :], precision=hi)
        + b2v)
    feat = hc2.reshape(B, N, -1)
    return jnp.einsum('bnf,pf->bnp', feat, wfc_t, precision=hi) + bfcv


if __name__ == "__main__":
    # ProposedSTGNN defaults: time_steps=7, in_channels=1, spatial_channels=16,
    # spatial_hidden=16, spatial_out=16, out_channels=16, temporal_kernel=3,
    # predicted_time_steps=1, drop_rate=0 (eval), batch_norm=False.
    B, N, T, Cin = 2, 16, 7, 1
    S, SH, SO, OC, K, P = 16, 16, 16, 16, 3, 1
    T1 = T - (K - 1)
    T2 = T1 - (K - 1)

    key = jax.random.PRNGKey(0)
    ks = jax.random.split(key, 10)

    def uni(k, shape, a):
        return jax.random.uniform(k, shape, jnp.float32, minval=-a, maxval=a)

    # deterministic parameters in PyTorch layouts
    w1_t = uni(ks[0], (S, Cin, 1, K), 1.0 / math.sqrt(Cin * K))           # conv1.weight
    b1v = uni(ks[1], (S,), 1.0 / math.sqrt(Cin * K))                      # conv1.bias
    th1 = uni(ks[2], (S, SH), 1.0 / math.sqrt(SH))                        # theta1
    th2 = uni(ks[3], (SH + S, SO), 1.0 / math.sqrt(SO))                   # theta2
    w2_t = uni(ks[4], (OC, SO + S, 1, K), 1.0 / math.sqrt((SO + S) * K))  # conv2.weight
    b2v = uni(ks[5], (OC,), 1.0 / math.sqrt((SO + S) * K))                # conv2.bias
    wfc_t = uni(ks[6], (P, T2 * OC), 1.0 / math.sqrt(T2 * OC))            # fc.weight
    bfcv = uni(ks[7], (P,), 1.0 / math.sqrt(T2 * OC))                     # fc.bias

    packed = pack_params(w1_t, b1v, th1, th2, w2_t, b2v, wfc_t, bfcv,
                         time_steps=T, temporal_kernel=K)

    # inputs: (B, N, T, Cin) features and a symmetrically normalized adjacency
    x = jax.random.normal(ks[8], (B, N, T, Cin), jnp.float32)
    a = (jax.random.uniform(ks[9], (N, N)) < 0.3).astype(jnp.float32)
    a = jnp.maximum(a, a.T) + jnp.eye(N, dtype=jnp.float32)
    dinv = 1.0 / jnp.sqrt(a.sum(axis=1))
    adj = a * dinv[:, None] * dinv[None, :]

    # TODO(synk): dropout (drop_rate=0 in eval) and optional BatchNorm2d
    # (batch_norm=False default) are identity here and are not implemented.

    out = stgnn_forward(x, adj, packed)
    out = jax.block_until_ready(out)

    ref = ref_forward(x, adj,
                      (w1_t, b1v, th1, th2, w2_t, b2v, wfc_t, bfcv),
                      temporal_kernel=K)
    assert out.shape == (B, N, P)
    err = float(jnp.max(jnp.abs(out - ref)))
    assert bool(jnp.allclose(out, ref, atol=2e-2, rtol=2e-2)), err
    print("KERNEL_OK")
</pallas_src>

<mosaic_0001>
module attributes {stable_mosaic.version = 11 : i64} {
  func.func @stgnn_kernel(%arg0: memref<32x7xf32, #tpu.memory_space<vmem>>, %arg1: memref<32x32xf32, #tpu.memory_space<vmem>>, %arg2: memref<7x80xf32, #tpu.memory_space<vmem>>, %arg3: memref<1x80xf32, #tpu.memory_space<vmem>>, %arg4: memref<80x80xf32, #tpu.memory_space<vmem>>, %arg5: memref<80x80xf32, #tpu.memory_space<vmem>>, %arg6: memref<80x80xf32, #tpu.memory_space<vmem>>, %arg7: memref<80x48xf32, #tpu.memory_space<vmem>>, %arg8: memref<80x48xf32, #tpu.memory_space<vmem>>, %arg9: memref<1x48xf32, #tpu.memory_space<vmem>>, %arg10: memref<48x1xf32, #tpu.memory_space<vmem>>, %arg11: memref<1x1xf32, #tpu.memory_space<vmem>>, %arg12: memref<32x1xf32, #tpu.memory_space<vmem>>) attributes {dimension_semantics = [], scalar_prefetch = 0 : i64, scratch_operands = 0 : i64, tpu.core_type = #tpu.core_type<tc>} {
    %c0 = arith.constant 0 : index
    %c0_0 = arith.constant 0 : index
    %0 = vector.load %arg1[%c0, %c0_0] : memref<32x32xf32, #tpu.memory_space<vmem>>, vector<32x32xf32>
    %c0_1 = arith.constant 0 : index
    %c0_2 = arith.constant 0 : index
    %1 = vector.load %arg0[%c0_1, %c0_2] : memref<32x7xf32, #tpu.memory_space<vmem>>, vector<32x7xf32>
    %c0_3 = arith.constant 0 : index
    %c0_4 = arith.constant 0 : index
    %2 = vector.load %arg2[%c0_3, %c0_4] : memref<7x80xf32, #tpu.memory_space<vmem>>, vector<7x80xf32>
    %cst = arith.constant dense<0.000000e+00> : vector<32x80xf32>
    %3 = tpu.matmul %1, %2, %cst {dimension_numbers = #tpu.dot_dimension_numbers<[1], [0], [0], [1], [0, 0, 1, 1], [], []>} : vector<32x7xf32>, vector<7x80xf32>, vector<32x80xf32> -> vector<32x80xf32>
    %c0_5 = arith.constant 0 : index
    %c0_6 = arith.constant 0 : index
    %4 = vector.load %arg3[%c0_5, %c0_6] : memref<1x80xf32, #tpu.memory_space<vmem>>, vector<1x80xf32>
    %5 = vector.broadcast %4 : vector<1x80xf32> to vector<32x80xf32>
    %6 = arith.addf %3, %5 : vector<32x80xf32>
    %cst_7 = arith.constant 0.000000e+00 : f32
    %7 = vector.broadcast %cst_7 : f32 to vector<32x80xf32>
    %8 = arith.maximumf %6, %7 : vector<32x80xf32>
    %c0_8 = arith.constant 0 : index
    %c0_9 = arith.constant 0 : index
    %9 = vector.load %arg4[%c0_8, %c0_9] : memref<80x80xf32, #tpu.memory_space<vmem>>, vector<80x80xf32>
    %cst_10 = arith.constant dense<0.000000e+00> : vector<32x80xf32>
    %10 = tpu.matmul %8, %9, %cst_10 {dimension_numbers = #tpu.dot_dimension_numbers<[1], [0], [0], [1], [0, 0, 1, 1], [], []>} : vector<32x80xf32>, vector<80x80xf32>, vector<32x80xf32> -> vector<32x80xf32>
    %cst_11 = arith.constant dense<0.000000e+00> : vector<32x80xf32>
    %11 = tpu.matmul %0, %10, %cst_11 {dimension_numbers = #tpu.dot_dimension_numbers<[1], [0], [0], [1], [0, 0, 1, 1], [], []>} : vector<32x32xf32>, vector<32x80xf32>, vector<32x80xf32> -> vector<32x80xf32>
    %cst_12 = arith.constant 0.000000e+00 : f32
    %12 = vector.broadcast %cst_12 : f32 to vector<32x80xf32>
    %13 = arith.maximumf %11, %12 : vector<32x80xf32>
    %c0_13 = arith.constant 0 : index
    %c0_14 = arith.constant 0 : index
    %14 = vector.load %arg5[%c0_13, %c0_14] : memref<80x80xf32, #tpu.memory_space<vmem>>, vector<80x80xf32>
    %cst_15 = arith.constant dense<0.000000e+00> : vector<32x80xf32>
    %15 = tpu.matmul %13, %14, %cst_15 {dimension_numbers = #tpu.dot_dimension_numbers<[1], [0], [0], [1], [0, 0, 1, 1], [], []>} : vector<32x80xf32>, vector<80x80xf32>, vector<32x80xf32> -> vector<32x80xf32>
    %c0_16 = arith.constant 0 : index
    %c0_17 = arith.constant 0 : index
    %16 = vector.load %arg6[%c0_16, %c0_17] : memref<80x80xf32, #tpu.memory_space<vmem>>, vector<80x80xf32>
    %cst_18 = arith.constant dense<0.000000e+00> : vector<32x80xf32>
    %17 = tpu.matmul %8, %16, %cst_18 {dimension_numbers = #tpu.dot_dimension_numbers<[1], [0], [0], [1], [0, 0, 1, 1], [], []>} : vector<32x80xf32>, vector<80x80xf32>, vector<32x80xf32> -> vector<32x80xf32>
    %18 = arith.addf %15, %17 : vector<32x80xf32>
    %cst_19 = arith.constant dense<0.000000e+00> : vector<32x80xf32>
    %19 = tpu.matmul %0, %18, %cst_19 {dimension_numbers = #tpu.dot_dimension_numbers<[1], [0], [0], [1], [0, 0, 1, 1], [], []>} : vector<32x32xf32>, vector<32x80xf32>, vector<32x80xf32> -> vector<32x80xf32>
    %cst_20 = arith.constant 0.000000e+00 : f32
    %20 = vector.broadcast %cst_20 : f32 to vector<32x80xf32>
    %21 = arith.maximumf %19, %20 : vector<32x80xf32>
    %c0_21 = arith.constant 0 : index
    %c0_22 = arith.constant 0 : index
    %22 = vector.load %arg7[%c0_21, %c0_22] : memref<80x48xf32, #tpu.memory_space<vmem>>, vector<80x48xf32>
    %cst_23 = arith.constant dense<0.000000e+00> : vector<32x48xf32>
    %23 = tpu.matmul %21, %22, %cst_23 {dimension_numbers = #tpu.dot_dimension_numbers<[1], [0], [0], [1], [0, 0, 1, 1], [], []>} : vector<32x80xf32>, vector<80x48xf32>, vector<32x48xf32> -> vector<32x48xf32>
    %c0_24 = arith.constant 0 : index
    %c0_25 = arith.constant 0 : index
    %24 = vector.load %arg8[%c0_24, %c0_25] : memref<80x48xf32, #tpu.memory_space<vmem>>, vector<80x48xf32>
    %cst_26 = arith.constant dense<0.000000e+00> : vector<32x48xf32>
    %25 = tpu.matmul %8, %24, %cst_26 {dimension_numbers = #tpu.dot_dimension_numbers<[1], [0], [0], [1], [0, 0, 1, 1], [], []>} : vector<32x80xf32>, vector<80x48xf32>, vector<32x48xf32> -> vector<32x48xf32>
    %26 = arith.addf %23, %25 : vector<32x48xf32>
    %c0_27 = arith.constant 0 : index
    %c0_28 = arith.constant 0 : index
    %27 = vector.load %arg9[%c0_27, %c0_28] : memref<1x48xf32, #tpu.memory_space<vmem>>, vector<1x48xf32>
    %28 = vector.broadcast %27 : vector<1x48xf32> to vector<32x48xf32>
    %29 = arith.addf %26, %28 : vector<32x48xf32>
    %cst_29 = arith.constant 0.000000e+00 : f32
    %30 = vector.broadcast %cst_29 : f32 to vector<32x48xf32>
    %31 = arith.maximumf %29, %30 : vector<32x48xf32>
    %c0_30 = arith.constant 0 : index
    %c0_31 = arith.constant 0 : index
    %32 = vector.load %arg10[%c0_30, %c0_31] : memref<48x1xf32, #tpu.memory_space<vmem>>, vector<48x1xf32>
    %cst_32 = arith.constant dense<0.000000e+00> : vector<32x1xf32>
    %33 = tpu.matmul %31, %32, %cst_32 {dimension_numbers = #tpu.dot_dimension_numbers<[1], [0], [0], [1], [0, 0, 1, 1], [], []>} : vector<32x48xf32>, vector<48x1xf32>, vector<32x1xf32> -> vector<32x1xf32>
    %c0_33 = arith.constant 0 : index
    %c0_34 = arith.constant 0 : index
    %34 = vector.load %arg11[%c0_33, %c0_34] : memref<1x1xf32, #tpu.memory_space<vmem>>, vector<1x1xf32>
    %35 = vector.broadcast %34 : vector<1x1xf32> to vector<32x1xf32>
    %36 = arith.addf %33, %35 : vector<32x1xf32>
    %c0_35 = arith.constant 0 : index
    %c0_36 = arith.constant 0 : index
    %37 = vector.load %arg12[%c0_35, %c0_36] : memref<32x1xf32, #tpu.memory_space<vmem>>, vector<32x1xf32>
    tpu.vector_store %arg12[%c0_35, %c0_36], %36 {strides = array<i32>} : memref<32x1xf32, #tpu.memory_space<vmem>>, vector<32x1xf32>,
    return
  }
}

</mosaic_0001>

<bundles_post_ra>
// kernel: tpu_custom_call.1
= control target key start
LH: loop header
LB: loop body
LE: loop exit
PB: predicated region body
PF: predicated region fallthrough
CT: control target
= control target key end

     0   :  { %s1854_s0 = inlined_call_operand.vmem [shape: f32[32,7], index: 0, kind: input, shape index: {}]   ;;  %s1855_s1 = inlined_call_operand.hbm [shape: f32[32,32], index: 1, kind: input, shape index: {}]   ;;  %s1856_s2 = inlined_call_operand.vmem [shape: f32[7,80], index: 2, kind: input, shape index: {}]   ;;  %s1857_s3 = inlined_call_operand.vmem [shape: f32[1,80], index: 3, kind: input, shape index: {}]   ;;  %s1858_s4 = inlined_call_operand.vmem [shape: f32[80,80], index: 4, kind: input, shape index: {}]   ;;  %s1859_s5 = inlined_call_operand.vmem [shape: f32[80,80], index: 5, kind: input, shape index: {}]   ;;  %s1860_s6 = inlined_call_operand.vmem [shape: f32[80,80], index: 6, kind: input, shape index: {}]   ;;  %s1861_s7 = inlined_call_operand.vmem [shape: f32[80,48], index: 7, kind: input, shape index: {}]   ;;  %s1862_s8 = inlined_call_operand.vmem [shape: f32[80,48], index: 8, kind: input, shape index: {}]   ;;  %s1863_s9 = inlined_call_operand.vmem [shape: f32[1,48], index: 9, kind: input, shape index: {}]   ;;  %s1864_s10 = inlined_call_operand.vmem [shape: f32[48,1], index: 10, kind: input, shape index: {}]   ;;  %s1865_s11 = inlined_call_operand.<no memory space> [shape: f32[1,1], index: 11, kind: input, shape index: {}]   ;;  %s1866_s12 = inlined_call_operand.vmem [shape: f32[32,1], index: 12, kind: output, shape index: {}]  }
   0x1   :  { %v17_v0 = vstv %s1865_s11 }
   0x2   :  { %18 = vst [vmem:[#allocation2] sm:$0x1] %v17_v0 }
   0x3   :  { %19 = vsyncpa [#allocation4], 0  ;;  %s1506_s23 = smov [#allocation3]   ;;  %s1482_s27 = scalar_lea.hbm %s1855_s1, 512 }
   0x4   :  { %s27_s24 = sshll.u32 %s1506_s23, 4  ;;  %p1483_p0 = scmp.ne.s32.totalorder %s1855_s1, %s1482_s27  ;;  %s28_s24 = int_to_ptr.vmem [resolvable:$true] %s27_s24 }
   0x5   :  { %p1486_p1 = scmp.lt.u32.totalorder %s1482_s27, %s1855_s1 }
   0x7   :  { %p1488_p2 = pnand %p1486_p1, %p1483_p0 }
   0x9   :  { %1491 = shalt.err (!%p1488_p2)
}
   0xa   :  { %s1492_s11 = scalar_lea.vmem %s28_s24, 512  ;;  %p1497_p4 = scmp.lt.s32.totalorder %s28_s24, %s28_s24 }
   0xb   :  { %p1493_p3 = scmp.ne.s32.totalorder %s28_s24, %s1492_s11  ;;  %p1498_p5 = scmp.lt.s32.totalorder %s1492_s11, %s1492_s11 }
   0xd   :  { %p1499_p6 = por %p1498_p5, %p1497_p4 }
   0xf   :  { %p1500_p7 = pnand %p1499_p6, %p1493_p3 }
  0x11   :  { %1503 = shalt.err (!%p1500_p7)
}
  0x12   :  { %s1507_s14 = smov 128   ;;  %s1508_s15 = smov 8  }
  0x13   :  { %33 = dma.hbm_to_vmem [thread:$0]  %s1855_s1, 512, %s28_s24, [#allocation4], %s1507_s14, %s1507_s14, %s1508_s15  }
  0x14   :  { %1504 = dma.done.wait [#allocation4], 512  }
  0x15   :  { %1505 = vsyncadd [#allocation4], 4294966784  ;;  %vm86_vm0 = vcmask 1046528   ;;  %vm73_vm1 = vcmask 56320   ;;  %v65_v1 = vld [vmem:[%s1856_s2] sm:$0x7f] }
  0x16   :  { %v61_v2 = vld [vmem:[%s1854_s0] sm:$0xff]  ;;  %v62_v3 = vld [vmem:[%s1854_s0 + $0x8] sm:$0xff]  ;;  %1159 = vmatprep.subr.msk.mxu0 %vm86_vm0, %v65_v1  ;;  %v63_v4 = vld [vmem:[%s1854_s0 + $0x10] sm:$0xff]  ;;  %vm189_vm2 = vcmask 654336   ;;  %vm287_vm3 = vcmask 261120   ;;  %vm910_vm4 = vcmask 392192  }
  0x17   :  { %1161 = vmatprep.mubr.msk.f32.mxu0 %vm73_vm1, %v61_v2  ;;  %v179_v5 = vld [vmem:[%s1858_s4] sm:$0xff]  ;;  %1160 = vmatpush3.msk.msra.mxu0 %vm86_vm0, %v65_v1  ;;  %v180_v6 = vld [vmem:[%s1858_s4 + $0x8] sm:$0xff]  ;;  %v181_v7 = vld [vmem:[%s1858_s4 + $0x10] sm:$0xff]  ;;  %vm1008_vm5 = vcmask 7168  }
  0x18   :  { %v182_v8 = vld [vmem:[%s1858_s4 + $0x18] sm:$0xff]  ;;  %1162 = vmatmul.mubr.msk.f32.vlgmr.msra.gmra.mrb[0].mxu0 %vm73_vm1, %v62_v3  ;;  %v1343_v9 = vpack.c.bf16 %v180_v6, %v179_v5  ;;  %v183_v12 = vld [vmem:[%s1858_s4 + $0x20] sm:$0xff]  ;;  %v184_v13 = vld [vmem:[%s1858_s4 + $0x28] sm:$0xff] }
  0x19   :  { %v1347_v10 = vpack.c.bf16 %v182_v8, %v181_v7  ;;  %1164 = vmatprep.mubr.msk.f32.mxu0 %vm73_vm1, %v63_v4  ;;  %v64_v11 = vld [vmem:[%s1854_s0 + $0x18] sm:$0xff]  ;;  %v1351_v14 = vpack.c.bf16 %v184_v13, %v183_v12  ;;  %v185_v15 = vld [vmem:[%s1858_s4 + $0x30] sm:$0xff]  ;;  %v187_v18 = vld [vmem:[%s1858_s4 + $0x40] sm:$0xff] }
  0x1a   :  { %1344 = vmatprep.subr.bf16.mxu1 %v1343_v9  ;;  %v186_v16 = vld [vmem:[%s1858_s4 + $0x38] sm:$0xff]  ;;  %v188_v19 = vld [vmem:[%s1858_s4 + $0x48] sm:$0xff]  ;;  %v1018_v21 = vld [vmem:[%s1857_s3] ss:$0 sm:$0xff] }
  0x1b   :  { %1346 = vmatpush3.bf16.msra.mxu1 %v1343_v9  ;;  %v1355_v17 = vpack.c.bf16 %v186_v16, %v185_v15  ;;  %v1359_v20 = vpack.c.bf16 %v188_v19, %v187_v18  ;;  %v57_v34 = vld [vmem:[#allocation3] sm:$0xff]  ;;  %v401_v44 = vld [vmem:[%s1860_s6 + $0x10] sm:$0xff]  ;;  %v402_v45 = vld [vmem:[%s1860_s6 + $0x18] sm:$0xff] }
  0x1c   :  { %1165 = vmatmul.mubr.msk.f32.gmra.mrb[2].mxu0 %vm73_vm1, %v64_v11  ;;  %1348 = vmatprep.subr.bf16.mxu1 %v1347_v10  ;;  %v399_v38 = vld [vmem:[%s1860_s6] sm:$0xff]  ;;  %v400_v39 = vld [vmem:[%s1860_s6 + $0x8] sm:$0xff]  ;;  %v1673_v47 = vld [vmem:[#allocation3 + $0x10] sm:$0xff]  ;;  %v1375_v48 = vpack.c.bf16 %v402_v45, %v401_v44 }
  0x1d   :  { %1201 = vmatprep.mubr.msk.f32.mxu0 %vm287_vm3, %v57_v34  ;;  %v1371_v43 = vpack.c.bf16 %v400_v39, %v399_v38  ;;  %v1671_v46 = vld [vmem:[#allocation3 + $0x8] sm:$0xff]  ;;  %v403_v49 = vld [vmem:[%s1860_s6 + $0x20] sm:$0xff]  ;;  %v406_v54 = vld [vmem:[%s1860_s6 + $0x38] sm:$0xff] }
  0x1e   :  { %v404_v50 = vld [vmem:[%s1860_s6 + $0x28] sm:$0xff]  ;;  %v1685_v51 = vld [vmem:[#allocation3 + $0x18] sm:$0xff]  ;;  %v405_v53 = vld [vmem:[%s1860_s6 + $0x30] sm:$0xff] }
  0x1f   :  { %1350 = vmatpush3.bf16.msra.mxu1 %v1347_v10  ;;  %v1379_v52 = vpack.c.bf16 %v404_v50, %v403_v49  ;;  %v1383_v55 = vpack.c.bf16 %v406_v54, %v405_v53  ;;  %v407_v56 = vld [vmem:[%s1860_s6 + $0x40] sm:$0xff]  ;;  %v408_v57 = vld [vmem:[%s1860_s6 + $0x48] sm:$0xff]  ;;  %v391_v62 = vld [vmem:[%s1859_s5 + $0x10] sm:$0xff] }
  0x20   :  { %1352 = vmatprep.subr.bf16.mxu1 %v1351_v14  ;;  %v1387_v58 = vpack.c.bf16 %v408_v57, %v407_v56  ;;  %v389_v59 = vld [vmem:[%s1859_s5] sm:$0xff]  ;;  %v390_v60 = vld [vmem:[%s1859_s5 + $0x8] sm:$0xff]  ;;  %v392_v63 = vld [vmem:[%s1859_s5 + $0x18] sm:$0xff] }
  0x21   :  { %v1391_v61 = vpack.c.bf16 %v390_v60, %v389_v59  ;;  %v1395_v0 = vpack.c.bf16 %v392_v63, %v391_v62  ;;  %v393_v1 = vld [vmem:[%s1859_s5 + $0x20] sm:$0xff]  ;;  %v394_v2 = vld [vmem:[%s1859_s5 + $0x28] sm:$0xff]  ;;  %v395_v4 = vld [vmem:[%s1859_s5 + $0x30] sm:$0xff] }
  0x22   :  { %v1399_v3 = vpack.c.bf16 %v394_v2, %v393_v1  ;;  %v396_v5 = vld [vmem:[%s1859_s5 + $0x38] sm:$0xff]  ;;  %v397_v7 = vld [vmem:[%s1859_s5 + $0x40] sm:$0xff]  ;;  %v398_v8 = vld [vmem:[%s1859_s5 + $0x48] sm:$0xff] }
  0x23   :  { %1354 = vmatpush3.bf16.msra.mxu1 %v1351_v14  ;;  %v1403_v6 = vpack.c.bf16 %v396_v5, %v395_v4  ;;  %v1407_v9 = vpack.c.bf16 %v398_v8, %v397_v7  ;;  %v697_v38 = vld [vmem:[%s1862_s8 + $0x38] sm:$0xff]  ;;  %v682_v45 = vld [vmem:[%s1861_s7 + $0x10] sm:$0xff]  ;;  %v685_v49 = vld [vmem:[%s1861_s7 + $0x28] sm:$0xff] }
  0x24   :  { %1356 = vmatprep.subr.bf16.mxu1 %v1355_v17  ;;  %v689_v53 = vld [vmem:[%s1861_s7 + $0x48] sm:$0xff]  ;;  %v899_v56 = vld [vmem:[%s1864_s10 + $0x10] sm:$0xff]  ;;  %v901_v4 = vld [vmem:[%s1864_s10 + $0x20] sm:$0xff] }
  0x25   :  { %v902_v5 = vld [vmem:[%s1864_s10 + $0x28] sm:$0xff]  ;;  %v1052_v7 = vld [vmem:[%s1863_s9] ss:$0 sm:$0xff] }
  0x27   :  { %1358 = vmatpush3.bf16.msra.mxu1 %v1355_v17 }
  0x28   :  { %1360 = vmatprep.subr.bf16.mxu1 %v1359_v20 }
  0x2b   :  { %1362 = vmatpush3.bf16.msra.mxu1 %v1359_v20 }
  0xeb   :  { %v1163_v22 = vpop.f32.mrb[0].mxu0 }
  0xec   :  { %v162_v23 = vadd.f32 %v1163_v22, %v1018_v21  ;;  %v156_v24 = vpop.f32.mrb[1].mxu0  ;;  %v691_v22 = vld [vmem:[%s1862_s8 + $0x8] sm:$0xff] }
  0xed   :  { %v157_v25 = vadd.f32 %v1018_v21, %v156_v24 }
  0xee   :  { %v1643_v28 = vmax.f32 %v162_v23, 0.0 }
  0xef   :  { %v1641_v26 = vmax.f32 %v157_v25, 0.0  ;;  %v1166_v27 = vpop.f32.mrb[2].mxu0 }
  0xf0   :  { %v172_v29 = vadd.f32 %v1166_v27, %v1018_v21  ;;  %v166_v30 = vpop.f32.mrb[3].mxu0 }
  0xf1   :  { %v167_v31 = vadd.f32 %v1018_v21, %v166_v30  ;;  %1187 = vmatprep.mubr.msk.f32.mxu1 %vm189_vm2, %v1641_v26  ;;  %v690_v21 = vld [vmem:[%s1862_s8] sm:$0xff]  ;;  %v693_v30 = vld [vmem:[%s1862_s8 + $0x18] sm:$0xff] }
  0xf2   :  { %1188 = vmatmul.mubr.msk.f32.vlgmr.msra.gmra.mrb[0].mxu1 %vm189_vm2, %v1643_v28  ;;  %v1651_v33 = vmax.f32 %v172_v29, 0.0  ;;  %v1419_v27 = vpack.c.bf16 %v691_v22, %v690_v21  ;;  %v692_v29 = vld [vmem:[%s1862_s8 + $0x10] sm:$0xff] }
  0xf3   :  { %v1649_v32 = vmax.f32 %v167_v31, 0.0  ;;  %v1423_v31 = vpack.c.bf16 %v693_v30, %v692_v29 }
  0xf5   :  { %1190 = vmatprep.mubr.msk.f32.mxu1 %vm189_vm2, %v1649_v32 }
  0xf6   :  { %1191 = vmatmul.mubr.msk.f32.gmra.mrb[2].mxu1 %vm189_vm2, %v1651_v33 }
  0xf7   :  { %1267 = vmatprep.mubr.msk.f32.mxu1 %vm287_vm3, %v57_v34  ;;  %v694_v34 = vld [vmem:[%s1862_s8 + $0x20] sm:$0xff] }
 0x1c5   :  { %v1189_v35 = vpop.f32.mrb[0].mxu1 }
 0x1c6   :  { %v268_v36 = vpop.f32.mrb[1].mxu1 }
 0x1c7   :  { %v1363_v37 = vpack.c.bf16 %v1189_v35, %v268_v36  ;;  %v695_v35 = vld [vmem:[%s1862_s8 + $0x28] sm:$0xff] }
 0x1c8   :  { %v1427_v36 = vpack.c.bf16 %v695_v35, %v694_v34 }
 0x1c9   :  { %v1192_v40 = vpop.f32.mrb[2].mxu1  ;;  %1364 = vmatprep.subr.bf16.mxu0 %v1363_v37 }
 0x1ca   :  { %v278_v41 = vpop.f32.mrb[3].mxu1  ;;  %1366 = vmatpush3.bf16.msra.mxu0 %v1363_v37  ;;  %v696_v37 = vld [vmem:[%s1862_s8 + $0x30] sm:$0xff] }
 0x1cb   :  { %v1367_v42 = vpack.c.bf16 %v1192_v40, %v278_v41  ;;  %v1431_v39 = vpack.c.bf16 %v697_v38, %v696_v37  ;;  %v698_v40 = vld [vmem:[%s1862_s8 + $0x40] sm:$0xff]  ;;  %v699_v41 = vld [vmem:[%s1862_s8 + $0x48] sm:$0xff] }
 0x1cd   :  { %1368 = vmatprep.subr.bf16.mxu0 %v1367_v42 }
 0x1ce   :  { %1370 = vmatpush3.bf16.msra.mxu0 %v1367_v42  ;;  %v1435_v42 = vpack.c.bf16 %v699_v41, %v698_v40 }
 0x1cf   :  { %1372 = vmatprep.subr.bf16.mxu0 %v1371_v43 }
 0x1d1   :  { %1202 = vmatmul.mubr.msk.f32.vlgmr.msra.gmra.mrb[4].mxu0 %vm287_vm3, %v1671_v46 }
 0x1d2   :  { %1374 = vmatpush3.bf16.msra.mxu0 %v1371_v43  ;;  %1204 = vmatprep.mubr.msk.f32.mxu0 %vm287_vm3, %v1673_v47  ;;  %v680_v43 = vld [vmem:[%s1861_s7] sm:$0xff] }
 0x1d3   :  { %1376 = vmatprep.subr.bf16.mxu0 %v1375_v48 }
 0x1d5   :  { %1205 = vmatmul.mubr.msk.f32.gmra.mrb[6].mxu0 %vm287_vm3, %v1685_v51 }
 0x1d6   :  { %1378 = vmatpush3.bf16.msra.mxu0 %v1375_v48  ;;  %1227 = vmatprep.mubr.msk.f32.mxu0 %vm189_vm2, %v1641_v26  ;;  %v684_v48 = vld [vmem:[%s1861_s7 + $0x20] sm:$0xff] }
 0x1d7   :  { %1380 = vmatprep.subr.bf16.mxu0 %v1379_v52  ;;  %v1447_v50 = vpack.c.bf16 %v685_v49, %v684_v48 }
 0x1da   :  { %1382 = vmatpush3.bf16.msra.mxu0 %v1379_v52  ;;  %v687_v52 = vld [vmem:[%s1861_s7 + $0x38] sm:$0xff] }
 0x1db   :  { %1384 = vmatprep.subr.bf16.mxu0 %v1383_v55 }
 0x1de   :  { %1386 = vmatpush3.bf16.msra.mxu0 %v1383_v55  ;;  %v898_v55 = vld [vmem:[%s1864_s10 + $0x8] sm:$0xff] }
 0x1df   :  { %1388 = vmatprep.subr.bf16.mxu0 %v1387_v58 }
 0x1e2   :  { %1390 = vmatpush3.bf16.msra.mxu0 %v1387_v58  ;;  %v900_v58 = vld [vmem:[%s1864_s10 + $0x18] sm:$0xff] }
 0x1e3   :  { %1392 = vmatprep.subr.bf16.mxu0 %v1391_v61  ;;  %v1463_v59 = vpack.c.bf16 %v900_v58, %v899_v56 }
 0x1e5   :  { %1228 = vmatmul.mubr.msk.f32.vlgmr.msra.gmra.mrb[8].mxu0 %vm189_vm2, %v1643_v28 }
 0x1e6   :  { %1230 = vmatprep.mubr.msk.f32.mxu0 %vm189_vm2, %v1649_v32  ;;  %1394 = vmatpush3.bf16.msra.mxu0 %v1391_v61 }
 0x1e7   :  { %1396 = vmatprep.subr.bf16.mxu0 %v1395_v0 }
 0x1e9   :  { %1231 = vmatmul.mubr.msk.f32.gmra.mrb[10].mxu0 %vm189_vm2, %v1651_v33 }
 0x1ea   :  { %1398 = vmatpush3.bf16.msra.mxu0 %v1395_v0 }
 0x1eb   :  { %1400 = vmatprep.subr.bf16.mxu0 %v1399_v3 }
 0x1ee   :  { %1402 = vmatpush3.bf16.msra.mxu0 %v1399_v3 }
 0x1ef   :  { %1404 = vmatprep.subr.bf16.mxu0 %v1403_v6 }
 0x1f2   :  { %1406 = vmatpush3.bf16.msra.mxu0 %v1403_v6  ;;  %v1467_v6 = vpack.c.bf16 %v902_v5, %v901_v4 }
 0x1f3   :  { %1408 = vmatprep.subr.bf16.mxu0 %v1407_v9 }
 0x1f6   :  { %1410 = vmatpush3.bf16.msra.mxu0 %v1407_v9 }
 0x2a4   :  { %v1203_v10 = vpop.f32.mrb[4].mxu0 }
 0x2a5   :  { %v366_v11 = vpop.f32.mrb[5].mxu0  ;;  %v386_v13 = vmax.f32 %v1203_v10, 0.0 }
 0x2a6   :  { %v385_v12 = vmax.f32 %v366_v11, 0.0 }
 0x2a8   :  { %v1206_v14 = vpop.f32.mrb[6].mxu0  ;;  %1253 = vmatprep.mubr.msk.f32.mxu0 %vm189_vm2, %v385_v12 }
 0x2a9   :  { %v376_v15 = vpop.f32.mrb[7].mxu0  ;;  %1254 = vmatmul.mubr.msk.f32.vlgmr.msra.gmra.mrb[8].mxu0 %vm189_vm2, %v386_v13  ;;  %v388_v17 = vmax.f32 %v1206_v14, 0.0 }
 0x2aa   :  { %v387_v16 = vmax.f32 %v376_v15, 0.0 }
 0x2ac   :  { %1256 = vmatprep.mubr.msk.f32.mxu0 %vm189_vm2, %v387_v16 }
 0x2ad   :  { %1257 = vmatmul.mubr.msk.f32.gmra.mrb[10].mxu0 %vm189_vm2, %v388_v17 }
 0x37c   :  { %v1255_v18 = vpop.f32.mrb[8].mxu0 }
 0x37d   :  { %v572_v19 = vpop.f32.mrb[9].mxu0 }
 0x37e   :  { %v1411_v20 = vpack.c.bf16 %v1255_v18, %v572_v19 }
 0x380   :  { %v1258_v23 = vpop.f32.mrb[10].mxu0  ;;  %1412 = vmatprep.subr.bf16.mxu1 %v1411_v20 }
 0x381   :  { %v582_v24 = vpop.f32.mrb[11].mxu0  ;;  %1414 = vmatpush3.bf16.msra.mxu1 %v1411_v20  ;;  %v1053_v20 = vld [vmem:[#allocation2] ss:$0 sm:$0xff] }
 0x382   :  { %v1415_v25 = vpack.c.bf16 %v1258_v23, %v582_v24 }
 0x384   :  { %1416 = vmatprep.subr.bf16.mxu1 %v1415_v25 }
 0x385   :  { %1418 = vmatpush3.bf16.msra.mxu1 %v1415_v25 }
 0x386   :  { %1420 = vmatprep.subr.bf16.mxu1 %v1419_v27 }
 0x388   :  { %1268 = vmatmul.mubr.msk.f32.vlgmr.msra.gmra.mrb[4].mxu1 %vm287_vm3, %v1671_v46  ;;  %v683_v46 = vld [vmem:[%s1861_s7 + $0x18] sm:$0xff] }
 0x389   :  { %1422 = vmatpush3.bf16.msra.mxu1 %v1419_v27  ;;  %1270 = vmatprep.mubr.msk.f32.mxu1 %vm287_vm3, %v1673_v47  ;;  %v1443_v47 = vpack.c.bf16 %v683_v46, %v682_v45 }
 0x38a   :  { %1424 = vmatprep.subr.bf16.mxu1 %v1423_v31 }
 0x38c   :  { %1271 = vmatmul.mubr.msk.f32.gmra.mrb[6].mxu1 %vm287_vm3, %v1685_v51  ;;  %v686_v51 = vld [vmem:[%s1861_s7 + $0x30] sm:$0xff] }
 0x38d   :  { %1426 = vmatpush3.bf16.msra.mxu1 %v1423_v31  ;;  %1293 = vmatprep.mubr.msk.f32.mxu1 %vm189_vm2, %v1641_v26  ;;  %v681_v26 = vld [vmem:[%s1861_s7 + $0x8] sm:$0xff] }
 0x38e   :  { %1428 = vmatprep.subr.bf16.mxu1 %v1427_v36  ;;  %v1439_v44 = vpack.c.bf16 %v681_v26, %v680_v43 }
 0x391   :  { %1430 = vmatpush3.bf16.msra.mxu1 %v1427_v36 }
 0x392   :  { %1432 = vmatprep.subr.bf16.mxu1 %v1431_v39 }
 0x395   :  { %1434 = vmatpush3.bf16.msra.mxu1 %v1431_v39 }
 0x396   :  { %1436 = vmatprep.subr.bf16.mxu1 %v1435_v42 }
 0x399   :  { %1438 = vmatpush3.bf16.msra.mxu1 %v1435_v42 }
 0x39a   :  { %1440 = vmatprep.subr.bf16.mxu1 %v1439_v44 }
 0x39c   :  { %1294 = vmatmul.mubr.msk.f32.vlgmr.msra.gmra.mrb[8].mxu1 %vm189_vm2, %v1643_v28  ;;  %v1451_v28 = vpack.c.bf16 %v687_v52, %v686_v51 }
 0x39d   :  { %1296 = vmatprep.mubr.msk.f32.mxu1 %vm189_vm2, %v1649_v32  ;;  %1442 = vmatpush3.bf16.msra.mxu1 %v1439_v44  ;;  %v688_v32 = vld [vmem:[%s1861_s7 + $0x40] sm:$0xff] }
 0x39e   :  { %1444 = vmatprep.subr.bf16.mxu1 %v1443_v47  ;;  %v1455_v54 = vpack.c.bf16 %v689_v53, %v688_v32 }
 0x3a0   :  { %1297 = vmatmul.mubr.msk.f32.gmra.mrb[10].mxu1 %vm189_vm2, %v1651_v33  ;;  %v897_v33 = vld [vmem:[%s1864_s10] sm:$0xff] }
 0x3a1   :  { %1446 = vmatpush3.bf16.msra.mxu1 %v1443_v47  ;;  %v1459_v57 = vpack.c.bf16 %v898_v55, %v897_v33 }
 0x3a2   :  { %1448 = vmatprep.subr.bf16.mxu1 %v1447_v50 }
 0x3a3   :  { %1460 = vmatprep.subr.bf16.mxu0 %v1459_v57 }
 0x3a4   :  { %1462 = vmatpush3.bf16.msra.mxu0 %v1459_v57 }
 0x3a5   :  { %1450 = vmatpush3.bf16.msra.mxu1 %v1447_v50  ;;  %1464 = vmatprep.subr.bf16.mxu0 %v1463_v59 }
 0x3a6   :  { %1452 = vmatprep.subr.bf16.mxu1 %v1451_v28 }
 0x3a8   :  { %1466 = vmatpush3.bf16.msra.mxu0 %v1463_v59 }
 0x3a9   :  { %1454 = vmatpush3.bf16.msra.mxu1 %v1451_v28  ;;  %1468 = vmatprep.subr.bf16.mxu0 %v1467_v6 }
 0x3aa   :  { %1456 = vmatprep.subr.bf16.mxu1 %v1455_v54 }
 0x3ac   :  { %1470 = vmatpush3.bf16.msra.mxu0 %v1467_v6 }
 0x3ad   :  { %1458 = vmatpush3.bf16.msra.mxu1 %v1455_v54 }
 0x45b   :  { %v1269_v60 = vpop.f32.mrb[4].mxu1 }
 0x45c   :  { %v657_v61 = vpop.f32.mrb[5].mxu1  ;;  %v677_v63 = vmax.f32 %v1269_v60, 0.0 }
 0x45d   :  { %v676_v62 = vmax.f32 %v657_v61, 0.0 }
 0x45f   :  { %v1272_v0 = vpop.f32.mrb[6].mxu1  ;;  %1319 = vmatprep.mubr.msk.f32.mxu1 %vm189_vm2, %v676_v62 }
 0x460   :  { %v667_v1 = vpop.f32.mrb[7].mxu1  ;;  %1320 = vmatmul.mubr.msk.f32.vlgmr.msra.gmra.mrb[8].mxu1 %vm189_vm2, %v677_v63  ;;  %v679_v3 = vmax.f32 %v1272_v0, 0.0 }
 0x461   :  { %v678_v2 = vmax.f32 %v667_v1, 0.0 }
 0x463   :  { %1322 = vmatprep.mubr.msk.f32.mxu1 %vm189_vm2, %v678_v2 }
 0x464   :  { %1323 = vmatmul.mubr.msk.f32.gmra.mrb[10].mxu1 %vm189_vm2, %v679_v3 }
 0x533   :  { %v1321_v8 = vpop.f32.mrb[8].mxu1 }
 0x534   :  { %v890_v9 = vadd.f32 %v1321_v8, %v1052_v7  ;;  %v863_v10 = vpop.f32.mrb[9].mxu1 }
 0x535   :  { %v889_v11 = vadd.f32 %v1052_v7, %v863_v10 }
 0x536   :  { %v894_v14 = vmax.f32 %v890_v9, 0.0 }
 0x537   :  { %v893_v12 = vmax.f32 %v889_v11, 0.0  ;;  %v1324_v13 = vpop.f32.mrb[10].mxu1 }
 0x538   :  { %v892_v15 = vadd.f32 %v1324_v13, %v1052_v7  ;;  %v873_v16 = vpop.f32.mrb[11].mxu1 }
 0x539   :  { %v891_v17 = vadd.f32 %v1052_v7, %v873_v16  ;;  %1337 = vmatprep.mubr.msk.f32.mxu0 %vm910_vm4, %v893_v12 }
 0x53a   :  { %1338 = vmatmul.mubr.msk.f32.vlgmr.msra.gmra.mrb[12].mxu0 %vm910_vm4, %v894_v14  ;;  %v896_v19 = vmax.f32 %v892_v15, 0.0 }
 0x53b   :  { %v895_v18 = vmax.f32 %v891_v17, 0.0 }
 0x53d   :  { %1340 = vmatprep.mubr.msk.f32.mxu0 %vm910_vm4, %v895_v18 }
 0x53e   :  { %1341 = vmatmul.mubr.msk.f32.gmra.mrb[14].mxu0 %vm910_vm4, %v896_v19 }
 0x60d   :  { %v1339_v21 = vpop.f32.mrb[12].mxu0 }
 0x60e   :  { %v995_v22 = vadd.f32 %v1339_v21, %v1053_v20  ;;  %v989_v23 = vpop.f32.mrb[13].mxu0 }
 0x60f   :  { %v990_v24 = vadd.f32 %v1053_v20, %v989_v23 }
 0x610   :  { %1010 = vst.msk [vmem:[%s1866_s12 + $0x8] sm:$0xff] %vm1008_vm5, %v995_v22 }
 0x611   :  { %1009 = vst.msk [vmem:[%s1866_s12] sm:$0xff] %vm1008_vm5, %v990_v24  ;;  %v1342_v25 = vpop.f32.mrb[14].mxu0 }
 0x612   :  { %v1005_v27 = vadd.f32 %v1342_v25, %v1053_v20  ;;  %v999_v29 = vpop.f32.mrb[15].mxu0 }
 0x613   :  { %v1000_v30 = vadd.f32 %v1053_v20, %v999_v29 }
 0x614   :  { %1012 = vst.msk [vmem:[%s1866_s12 + $0x18] sm:$0xff] %vm1008_vm5, %v1005_v27 }
 0x615   :  { %1011 = vst.msk [vmem:[%s1866_s12 + $0x10] sm:$0xff] %vm1008_vm5, %v1000_v30 }
 0x616   :  { %1017 = vsyncpa [#allocation4], 1 }

</bundles_post_ra>
